<compile_context>
chip_gen: v7x
topology: tpu7x:2x2x1
jax: 0.10.0
libtpu: 0.0.40
codegen_flags: <defaults>
</compile_context>

<pallas_src>
import jax
import jax.numpy as jnp
from jax.experimental import pallas as pl
from jax.experimental.pallas import tpu as pltpu

IN_FEATURES = 784
PAD_FEATURES = 896   # 7 * 128 lanes (zero-padded)
HIDDEN = 64
NUM_CLASSES = 10
DEFAULT_TILE_B = 512


def _round_up(n, m):
    return ((n + m - 1) // m) * m


def mlp_kernel(x_ref,
               w1_ref, b1_ref,
               w2_ref, b2_ref,
               w3_ref, b3_ref,
               w4_ref, b4_ref,
               o_ref):
    # x tile: (TILE_B, 896) bf16
    x = x_ref[...]

    # Layer 1: bf16 x bf16 -> f32 accumulate, bias + ReLU in f32, downcast.
    h = jnp.dot(x, w1_ref[...], preferred_element_type=jnp.float32) + b1_ref[...]
    h = jnp.maximum(h, 0.0).astype(jnp.bfloat16)

    h = jnp.dot(h, w2_ref[...], preferred_element_type=jnp.float32) + b2_ref[...]
    h = jnp.maximum(h, 0.0).astype(jnp.bfloat16)

    h = jnp.dot(h, w3_ref[...], preferred_element_type=jnp.float32) + b3_ref[...]
    h = jnp.maximum(h, 0.0).astype(jnp.bfloat16)

    logits = jnp.dot(h, w4_ref[...], preferred_element_type=jnp.float32) + b4_ref[...]

    # log_softmax over the class dim (numerically stable, f32).
    m = jnp.max(logits, axis=1, keepdims=True)
    shifted = logits - m
    lse = jnp.log(jnp.sum(jnp.exp(shifted), axis=1, keepdims=True))
    o_ref[...] = shifted - lse


def net_forward(x, params, tile_b=DEFAULT_TILE_B):
    """x: (B, 784) f32.  params: [(w(in,out), b(1,out)) x 4] f32.  -> (B, 10) f32."""
    (w1, b1), (w2, b2), (w3, b3), (w4, b4) = params
    B = x.shape[0]

    # Batch tile: multiple of 8 sublanes, no bigger than the (padded) batch.
    tile_b = min(tile_b, _round_up(B, 8))
    B_pad = _round_up(B, tile_b)
    grid = (B_pad // tile_b,)

    # Host-side prep: bf16 cast, zero-pad features 784 -> 896 and batch -> B_pad.
    x_p = jnp.zeros((B_pad, PAD_FEATURES), jnp.bfloat16)
    x_p = x_p.at[:B, :IN_FEATURES].set(x.astype(jnp.bfloat16))
    w1_p = jnp.zeros((PAD_FEATURES, HIDDEN), jnp.bfloat16)
    w1_p = w1_p.at[:IN_FEATURES, :].set(w1.astype(jnp.bfloat16))
    w2_p = w2.astype(jnp.bfloat16)
    w3_p = w3.astype(jnp.bfloat16)
    w4_p = w4.astype(jnp.bfloat16)
    b1_p = b1.astype(jnp.float32)
    b2_p = b2.astype(jnp.float32)
    b3_p = b3.astype(jnp.float32)
    b4_p = b4.astype(jnp.float32)

    # Weights/biases: full-array blocks, constant index_map -> fetched once,
    # stay resident across the batch grid.
    def const_spec(shape):
        return pl.BlockSpec(shape, lambda i: (0, 0))

    in_specs = [
        pl.BlockSpec((tile_b, PAD_FEATURES), lambda i: (i, 0)),   # x
        const_spec((PAD_FEATURES, HIDDEN)), const_spec((1, HIDDEN)),
        const_spec((HIDDEN, HIDDEN)),       const_spec((1, HIDDEN)),
        const_spec((HIDDEN, HIDDEN)),       const_spec((1, HIDDEN)),
        const_spec((HIDDEN, NUM_CLASSES)),  const_spec((1, NUM_CLASSES)),
    ]
    out_specs = pl.BlockSpec((tile_b, NUM_CLASSES), lambda i: (i, 0))

    # Advisory cost estimate for the surrounding XLA schedule.
    flops = 2 * B_pad * (PAD_FEATURES * HIDDEN + 2 * HIDDEN * HIDDEN
                         + HIDDEN * NUM_CLASSES)
    weight_bytes = (PAD_FEATURES * HIDDEN + 2 * HIDDEN * HIDDEN
                    + HIDDEN * NUM_CLASSES) * 2 + 4 * (3 * HIDDEN + NUM_CLASSES)
    bytes_accessed = B_pad * PAD_FEATURES * 2 + weight_bytes + B_pad * NUM_CLASSES * 4
    cost = pl.CostEstimate(flops=int(flops),
                           transcendentals=int(B_pad * (NUM_CLASSES + 1)),
                           bytes_accessed=int(bytes_accessed))

    out = pl.pallas_call(
        mlp_kernel,
        out_shape=jax.ShapeDtypeStruct((B_pad, NUM_CLASSES), jnp.float32),
        grid=grid,
        in_specs=in_specs,
        out_specs=out_specs,
        compiler_params=pltpu.CompilerParams(
            dimension_semantics=("parallel",),
        ),
        cost_estimate=cost,
    )(x_p, w1_p, b1_p, w2_p, b2_p, w3_p, b3_p, w4_p, b4_p)

    return out[:B]


def init_params(key):
    """Deterministic init mimicking nn.Linear default (uniform +/- 1/sqrt(fan_in))."""
    dims = [(IN_FEATURES, HIDDEN), (HIDDEN, HIDDEN), (HIDDEN, HIDDEN),
            (HIDDEN, NUM_CLASSES)]
    params = []
    for i, (fan_in, fan_out) in enumerate(dims):
        kw, kb = jax.random.split(jax.random.fold_in(key, i))
        bound = 1.0 / (fan_in ** 0.5)
        # stored as (in, out) — transposed relative to PyTorch's (out, in)
        w = jax.random.uniform(kw, (fan_in, fan_out), jnp.float32, -bound, bound)
        b = jax.random.uniform(kb, (1, fan_out), jnp.float32, -bound, bound)
        params.append((w, b))
    return params


def reference_forward(x, params):
    """Pure-f32 JAX reference matching the PyTorch module semantics."""
    h = x
    for i, (w, b) in enumerate(params):
        h = h @ w + b
        if i < 3:
            h = jnp.maximum(h, 0.0)
    return jax.nn.log_softmax(h, axis=1)


if __name__ == "__main__":
    key = jax.random.PRNGKey(0)
    kx, kp = jax.random.split(key)

    B = 8
    x = jax.random.normal(kx, (B, IN_FEATURES), jnp.float32)
    params = init_params(kp)

    out = net_forward(x, params)
    out = jax.block_until_ready(out)

    ref = reference_forward(x, params)
    assert out.shape == (B, NUM_CLASSES)
    # bf16 inputs/weights -> relaxed tolerance vs the f32 reference.
    assert jnp.allclose(out, ref, atol=5e-2, rtol=5e-2), "mismatch vs JAX reference"

    print("KERNEL_OK")
</pallas_src>

<mosaic_0001>
module attributes {stable_mosaic.version = 11 : i64} {
  func.func @mlp_kernel(%arg0: i32, %arg1: memref<8x896xbf16, #tpu.memory_space<vmem>>, %arg2: memref<896x64xbf16, #tpu.memory_space<vmem>>, %arg3: memref<1x64xf32, #tpu.memory_space<vmem>>, %arg4: memref<64x64xbf16, #tpu.memory_space<vmem>>, %arg5: memref<1x64xf32, #tpu.memory_space<vmem>>, %arg6: memref<64x64xbf16, #tpu.memory_space<vmem>>, %arg7: memref<1x64xf32, #tpu.memory_space<vmem>>, %arg8: memref<64x10xbf16, #tpu.memory_space<vmem>>, %arg9: memref<1x10xf32, #tpu.memory_space<vmem>>, %arg10: memref<8x10xf32, #tpu.memory_space<vmem>>) attributes {dimension_semantics = [#tpu.dimension_semantics<parallel>], iteration_bounds = array<i64: 1>, scalar_prefetch = 0 : i64, scratch_operands = 0 : i64, tpu.core_type = #tpu.core_type<tc>, window_params = [{transform_indices = @transform_0, window_bounds = array<i64: 8, 896>}, {pipeline_mode = #tpu.pipeline_mode<synchronous>, transform_indices = @transform_1, window_bounds = array<i64: 896, 64>}, {pipeline_mode = #tpu.pipeline_mode<synchronous>, transform_indices = @transform_2, window_bounds = array<i64: 1, 64>}, {pipeline_mode = #tpu.pipeline_mode<synchronous>, transform_indices = @transform_3, window_bounds = array<i64: 64, 64>}, {pipeline_mode = #tpu.pipeline_mode<synchronous>, transform_indices = @transform_4, window_bounds = array<i64: 1, 64>}, {pipeline_mode = #tpu.pipeline_mode<synchronous>, transform_indices = @transform_5, window_bounds = array<i64: 64, 64>}, {pipeline_mode = #tpu.pipeline_mode<synchronous>, transform_indices = @transform_6, window_bounds = array<i64: 1, 64>}, {pipeline_mode = #tpu.pipeline_mode<synchronous>, transform_indices = @transform_7, window_bounds = array<i64: 64, 10>}, {pipeline_mode = #tpu.pipeline_mode<synchronous>, transform_indices = @transform_8, window_bounds = array<i64: 1, 10>}, {transform_indices = @transform_9, window_bounds = array<i64: 8, 10>}]} {
    %c0 = arith.constant 0 : index
    %c0_0 = arith.constant 0 : index
    %0 = vector.load %arg1[%c0, %c0_0] : memref<8x896xbf16, #tpu.memory_space<vmem>>, vector<8x896xbf16>
    %c0_1 = arith.constant 0 : index
    %c0_2 = arith.constant 0 : index
    %1 = vector.load %arg2[%c0_1, %c0_2] : memref<896x64xbf16, #tpu.memory_space<vmem>>, vector<896x64xbf16>
    %cst = arith.constant dense<0.000000e+00> : vector<8x64xf32>
    %2 = tpu.matmul %0, %1, %cst {dimension_numbers = #tpu.dot_dimension_numbers<[1], [0], [0], [1], [0, 0, 1, 1], [], []>} : vector<8x896xbf16>, vector<896x64xbf16>, vector<8x64xf32> -> vector<8x64xf32>
    %c0_3 = arith.constant 0 : index
    %c0_4 = arith.constant 0 : index
    %3 = vector.load %arg3[%c0_3, %c0_4] : memref<1x64xf32, #tpu.memory_space<vmem>>, vector<1x64xf32>
    %4 = vector.broadcast %3 : vector<1x64xf32> to vector<8x64xf32>
    %5 = arith.addf %2, %4 : vector<8x64xf32>
    %cst_5 = arith.constant 0.000000e+00 : f32
    %6 = vector.broadcast %cst_5 : f32 to vector<8x64xf32>
    %7 = arith.maximumf %5, %6 : vector<8x64xf32>
    %8 = arith.truncf %7 : vector<8x64xf32> to vector<8x64xbf16>
    %c0_6 = arith.constant 0 : index
    %c0_7 = arith.constant 0 : index
    %9 = vector.load %arg4[%c0_6, %c0_7] : memref<64x64xbf16, #tpu.memory_space<vmem>>, vector<64x64xbf16>
    %cst_8 = arith.constant dense<0.000000e+00> : vector<8x64xf32>
    %10 = tpu.matmul %8, %9, %cst_8 {dimension_numbers = #tpu.dot_dimension_numbers<[1], [0], [0], [1], [0, 0, 1, 1], [], []>} : vector<8x64xbf16>, vector<64x64xbf16>, vector<8x64xf32> -> vector<8x64xf32>
    %c0_9 = arith.constant 0 : index
    %c0_10 = arith.constant 0 : index
    %11 = vector.load %arg5[%c0_9, %c0_10] : memref<1x64xf32, #tpu.memory_space<vmem>>, vector<1x64xf32>
    %12 = vector.broadcast %11 : vector<1x64xf32> to vector<8x64xf32>
    %13 = arith.addf %10, %12 : vector<8x64xf32>
    %cst_11 = arith.constant 0.000000e+00 : f32
    %14 = vector.broadcast %cst_11 : f32 to vector<8x64xf32>
    %15 = arith.maximumf %13, %14 : vector<8x64xf32>
    %16 = arith.truncf %15 : vector<8x64xf32> to vector<8x64xbf16>
    %c0_12 = arith.constant 0 : index
    %c0_13 = arith.constant 0 : index
    %17 = vector.load %arg6[%c0_12, %c0_13] : memref<64x64xbf16, #tpu.memory_space<vmem>>, vector<64x64xbf16>
    %cst_14 = arith.constant dense<0.000000e+00> : vector<8x64xf32>
    %18 = tpu.matmul %16, %17, %cst_14 {dimension_numbers = #tpu.dot_dimension_numbers<[1], [0], [0], [1], [0, 0, 1, 1], [], []>} : vector<8x64xbf16>, vector<64x64xbf16>, vector<8x64xf32> -> vector<8x64xf32>
    %c0_15 = arith.constant 0 : index
    %c0_16 = arith.constant 0 : index
    %19 = vector.load %arg7[%c0_15, %c0_16] : memref<1x64xf32, #tpu.memory_space<vmem>>, vector<1x64xf32>
    %20 = vector.broadcast %19 : vector<1x64xf32> to vector<8x64xf32>
    %21 = arith.addf %18, %20 : vector<8x64xf32>
    %cst_17 = arith.constant 0.000000e+00 : f32
    %22 = vector.broadcast %cst_17 : f32 to vector<8x64xf32>
    %23 = arith.maximumf %21, %22 : vector<8x64xf32>
    %24 = arith.truncf %23 : vector<8x64xf32> to vector<8x64xbf16>
    %c0_18 = arith.constant 0 : index
    %c0_19 = arith.constant 0 : index
    %25 = vector.load %arg8[%c0_18, %c0_19] : memref<64x10xbf16, #tpu.memory_space<vmem>>, vector<64x10xbf16>
    %cst_20 = arith.constant dense<0.000000e+00> : vector<8x10xf32>
    %26 = tpu.matmul %24, %25, %cst_20 {dimension_numbers = #tpu.dot_dimension_numbers<[1], [0], [0], [1], [0, 0, 1, 1], [], []>} : vector<8x64xbf16>, vector<64x10xbf16>, vector<8x10xf32> -> vector<8x10xf32>
    %c0_21 = arith.constant 0 : index
    %c0_22 = arith.constant 0 : index
    %27 = vector.load %arg9[%c0_21, %c0_22] : memref<1x10xf32, #tpu.memory_space<vmem>>, vector<1x10xf32>
    %28 = vector.broadcast %27 : vector<1x10xf32> to vector<8x10xf32>
    %29 = arith.addf %26, %28 : vector<8x10xf32>
    %cst_23 = arith.constant dense<0xFF800000> : vector<8xf32>
    %30 = vector.multi_reduction <maximumf>, %29, %cst_23 [1] : vector<8x10xf32> to vector<8xf32>
    %31 = vector.shape_cast %30 : vector<8xf32> to vector<8x1xf32>
    %32 = vector.broadcast %31 : vector<8x1xf32> to vector<8x10xf32>
    %33 = arith.subf %29, %32 : vector<8x10xf32>
    %34 = math.exp %33 : vector<8x10xf32>
    %cst_24 = arith.constant dense<0.000000e+00> : vector<8xf32>
    %35 = vector.multi_reduction <add>, %34, %cst_24 [1] : vector<8x10xf32> to vector<8xf32>
    %36 = vector.shape_cast %35 : vector<8xf32> to vector<8x1xf32>
    %37 = math.log %36 : vector<8x1xf32>
    %38 = vector.broadcast %37 : vector<8x1xf32> to vector<8x10xf32>
    %39 = arith.subf %33, %38 : vector<8x10xf32>
    %c0_25 = arith.constant 0 : index
    %c0_26 = arith.constant 0 : index
    %40 = vector.load %arg10[%c0_25, %c0_26] : memref<8x10xf32, #tpu.memory_space<vmem>>, vector<8x10xf32>
    tpu.vector_store %arg10[%c0_25, %c0_26], %39 {strides = array<i32>} : memref<8x10xf32, #tpu.memory_space<vmem>>, vector<8x10xf32>,
    return
  }
  func.func @transform_0(%arg0: i32) -> (i32, i32) {
    %c0_i32 = arith.constant 0 : i32
    %c0_i32_0 = arith.constant 0 : i32
    return %arg0, %c0_i32 : i32, i32
  }
  func.func @transform_1(%arg0: i32) -> (i32, i32) {
    %c0_i32 = arith.constant 0 : i32
    %c0_i32_0 = arith.constant 0 : i32
    %c0_i32_1 = arith.constant 0 : i32
    return %c0_i32, %c0_i32_0 : i32, i32
  }
  func.func @transform_2(%arg0: i32) -> (i32, i32) {
    %c0_i32 = arith.constant 0 : i32
    %c0_i32_0 = arith.constant 0 : i32
    %c0_i32_1 = arith.constant 0 : i32
    return %c0_i32, %c0_i32_0 : i32, i32
  }
  func.func @transform_3(%arg0: i32) -> (i32, i32) {
    %c0_i32 = arith.constant 0 : i32
    %c0_i32_0 = arith.constant 0 : i32
    %c0_i32_1 = arith.constant 0 : i32
    return %c0_i32, %c0_i32_0 : i32, i32
  }
  func.func @transform_4(%arg0: i32) -> (i32, i32) {
    %c0_i32 = arith.constant 0 : i32
    %c0_i32_0 = arith.constant 0 : i32
    %c0_i32_1 = arith.constant 0 : i32
    return %c0_i32, %c0_i32_0 : i32, i32
  }
  func.func @transform_5(%arg0: i32) -> (i32, i32) {
    %c0_i32 = arith.constant 0 : i32
    %c0_i32_0 = arith.constant 0 : i32
    %c0_i32_1 = arith.constant 0 : i32
    return %c0_i32, %c0_i32_0 : i32, i32
  }
  func.func @transform_6(%arg0: i32) -> (i32, i32) {
    %c0_i32 = arith.constant 0 : i32
    %c0_i32_0 = arith.constant 0 : i32
    %c0_i32_1 = arith.constant 0 : i32
    return %c0_i32, %c0_i32_0 : i32, i32
  }
  func.func @transform_7(%arg0: i32) -> (i32, i32) {
    %c0_i32 = arith.constant 0 : i32
    %c0_i32_0 = arith.constant 0 : i32
    %c0_i32_1 = arith.constant 0 : i32
    return %c0_i32, %c0_i32_0 : i32, i32
  }
  func.func @transform_8(%arg0: i32) -> (i32, i32) {
    %c0_i32 = arith.constant 0 : i32
    %c0_i32_0 = arith.constant 0 : i32
    %c0_i32_1 = arith.constant 0 : i32
    return %c0_i32, %c0_i32_0 : i32, i32
  }
  func.func @transform_9(%arg0: i32) -> (i32, i32) {
    %c0_i32 = arith.constant 0 : i32
    %c0_i32_0 = arith.constant 0 : i32
    return %arg0, %c0_i32 : i32, i32
  }
}

</mosaic_0001>

<bundles_post_ra>
// kernel: tpu_custom_call.1
= control target key start
LH: loop header
LB: loop body
LE: loop exit
PB: predicated region body
PF: predicated region fallthrough
CT: control target
= control target key end

     0   :  { %v1293_v42 = vmov 0.0   ;;  %vm1294_vm0 = vmmov 0   ;;  %s1620_s0 = inlined_call_operand.vmem [shape: bf16[8,896], index: 0, kind: input, shape index: {}]   ;;  %s1621_s1 = inlined_call_operand.vmem [shape: bf16[896,64], index: 1, kind: input, shape index: {}]   ;;  %s1622_s2 = inlined_call_operand.vmem [shape: f32[1,64], index: 2, kind: input, shape index: {}]   ;;  %s1623_s3 = inlined_call_operand.vmem [shape: bf16[64,64], index: 3, kind: input, shape index: {}]   ;;  %s1624_s4 = inlined_call_operand.vmem [shape: f32[1,64], index: 4, kind: input, shape index: {}]   ;;  %s1625_s5 = inlined_call_operand.vmem [shape: bf16[64,64], index: 5, kind: input, shape index: {}]   ;;  %s1626_s6 = inlined_call_operand.vmem [shape: f32[1,64], index: 6, kind: input, shape index: {}]   ;;  %s1627_s7 = inlined_call_operand.vmem [shape: bf16[64,10], index: 7, kind: input, shape index: {}]   ;;  %s1628_s8 = inlined_call_operand.vmem [shape: f32[1,10], index: 8, kind: input, shape index: {}]   ;;  %s1629_s9 = inlined_call_operand.hbm [shape: f32[8,10], index: 9, kind: output, shape index: {}]  }
   0x1   :  { %v1190_v0 = vld [vmem:[%s1621_s1 + $0x40] sm:$0xff]   ;;  %v1194_v4 = vld [vmem:[%s1621_s1 + $0x48] sm:$0xff]   ;;  %v1198_v8 = vld [vmem:[%s1621_s1 + $0x50] sm:$0xff]  }
   0x2   :  { %v1191_v1 = vld [vmem:[%s1621_s1] sm:$0xff]   ;;  %1041 = vmatprep.subr.bf16.mxu0 %v1190_v0  ;;  %v1195_v5 = vld [vmem:[%s1621_s1 + $0x8] sm:$0xff]   ;;  %v1199_v9 = vld [vmem:[%s1621_s1 + $0x10] sm:$0xff]  }
   0x3   :  { %v1192_v2 = vld [vmem:[%s1621_s1 + $0xc0] sm:$0xff]   ;;  %1042 = vmatpush3.bf16.msra.mxu0 %v1191_v1  ;;  %v1196_v6 = vld [vmem:[%s1621_s1 + $0xc8] sm:$0xff]   ;;  %v1200_v10 = vld [vmem:[%s1621_s1 + $0xd0] sm:$0xff]  }
   0x4   :  { %v1193_v3 = vld [vmem:[%s1621_s1 + $0x80] sm:$0xff]   ;;  %1063 = vmatprep.subr.bf16.mxu1 %v1192_v2  ;;  %1043 = vmatprep.subr.bf16.mxu0 %v1194_v4  ;;  %v1197_v7 = vld [vmem:[%s1621_s1 + $0x88] sm:$0xff]   ;;  %v1201_v11 = vld [vmem:[%s1621_s1 + $0x90] sm:$0xff]  }
   0x5   :  { %1064 = vmatpush3.bf16.msra.mxu1 %v1193_v3  ;;  %v1202_v12 = vld [vmem:[%s1621_s1 + $0x58] sm:$0xff]   ;;  %v1206_v16 = vld [vmem:[%s1621_s1 + $0x60] sm:$0xff]   ;;  %v1210_v20 = vld [vmem:[%s1621_s1 + $0x68] sm:$0xff]  }
   0x6   :  { %1065 = vmatprep.subr.bf16.mxu1 %v1196_v6  ;;  %v1203_v13 = vld [vmem:[%s1621_s1 + $0x18] sm:$0xff]   ;;  %v1207_v17 = vld [vmem:[%s1621_s1 + $0x20] sm:$0xff]   ;;  %v1211_v21 = vld [vmem:[%s1621_s1 + $0x28] sm:$0xff]  }
   0x7   :  { %1044 = vmatpush3.bf16.msra.mxu0 %v1195_v5  ;;  %v1204_v14 = vld [vmem:[%s1621_s1 + $0xd8] sm:$0xff]   ;;  %v1208_v18 = vld [vmem:[%s1621_s1 + $0xe0] sm:$0xff]   ;;  %v1212_v22 = vld [vmem:[%s1621_s1 + $0xe8] sm:$0xff]  }
   0x8   :  { %1045 = vmatprep.subr.bf16.mxu0 %v1198_v8  ;;  %v1205_v15 = vld [vmem:[%s1621_s1 + $0x98] sm:$0xff]   ;;  %v1209_v19 = vld [vmem:[%s1621_s1 + $0xa0] sm:$0xff]   ;;  %v1213_v23 = vld [vmem:[%s1621_s1 + $0xa8] sm:$0xff]  }
   0x9   :  { %1066 = vmatpush3.bf16.msra.mxu1 %v1197_v7  ;;  %v1214_v24 = vld [vmem:[%s1621_s1 + $0x70] sm:$0xff]   ;;  %v1218_v28 = vld [vmem:[%s1621_s1 + $0x78] sm:$0xff]   ;;  %v34_v31 = vld [vmem:[%s1620_s0] sm:$0xff] }
   0xa   :  { %1067 = vmatprep.subr.bf16.mxu1 %v1200_v10  ;;  %v1215_v25 = vld [vmem:[%s1621_s1 + $0x30] sm:$0xff]   ;;  %v1219_v29 = vld [vmem:[%s1621_s1 + $0x38] sm:$0xff]   ;;  %v960_v32 = vcombine.low %v34_v31, %v34_v31  ;;  %v961_v33 = vcombine.high %v34_v31, %v34_v31  ;;  %v1224_v35 = vld [vmem:[%s1621_s1 + $0x140] sm:$0xff]  }
   0xb   :  { %1046 = vmatpush3.bf16.msra.mxu0 %v1199_v9  ;;  %v1216_v26 = vld [vmem:[%s1621_s1 + $0xf0] sm:$0xff]   ;;  %v1220_v30 = vld [vmem:[%s1621_s1 + $0xf8] sm:$0xff]   ;;  %v35_v36 = vld [vmem:[%s1620_s0 + $0x8] sm:$0xff] }
   0xc   :  { %1047 = vmatprep.subr.bf16.mxu0 %v1202_v12  ;;  %v1217_v27 = vld [vmem:[%s1621_s1 + $0xb0] sm:$0xff]   ;;  %v1223_v34 = vld [vmem:[%s1621_s1 + $0xb8] sm:$0xff]   ;;  %550 = vmatprep.mubr.bf16.mxu0 %v961_v33  ;;  %v962_v37 = vcombine.low %v35_v36, %v35_v36  ;;  %v963_v38 = vcombine.high %v35_v36, %v35_v36  ;;  %v1227_v39 = vld [vmem:[%s1621_s1 + $0x100] sm:$0xff]  }
   0xd   :  { %1068 = vmatpush3.bf16.msra.mxu1 %v1201_v11  ;;  %v1228_v40 = vld [vmem:[%s1621_s1 + $0x180] sm:$0xff]   ;;  %v1229_v41 = vld [vmem:[%s1621_s1 + $0x148] sm:$0xff]   ;;  %v1232_v45 = vld [vmem:[%s1621_s1 + $0x150] sm:$0xff]  }
   0xe   :  { %1069 = vmatprep.subr.bf16.mxu1 %v1204_v14  ;;  %590 = vmatprep.mubr.bf16.mxu1 %v963_v38  ;;  %v1230_v43 = vld [vmem:[%s1621_s1 + $0x108] sm:$0xff]   ;;  %v1233_v46 = vld [vmem:[%s1621_s1 + $0x110] sm:$0xff]   ;;  %v1235_v48 = vld [vmem:[%s1621_s1 + $0x158] sm:$0xff]  }
   0xf   :  { %1048 = vmatpush3.bf16.msra.mxu0 %v1203_v13  ;;  %v1231_v44 = vld [vmem:[%s1621_s1 + $0x188] sm:$0xff]   ;;  %v1234_v47 = vld [vmem:[%s1621_s1 + $0x190] sm:$0xff]   ;;  %v1236_v49 = vld [vmem:[%s1621_s1 + $0x118] sm:$0xff]  }
  0x10   :  { %1049 = vmatprep.subr.bf16.mxu0 %v1206_v16  ;;  %v1238_v50 = vld [vmem:[%s1621_s1 + $0x160] sm:$0xff]   ;;  %v1237_v51 = vld [vmem:[%s1621_s1 + $0x198] sm:$0xff]   ;;  %v1241_v53 = vld [vmem:[%s1621_s1 + $0x168] sm:$0xff]  }
  0x11   :  { %1070 = vmatpush3.bf16.msra.mxu1 %v1205_v15  ;;  %v1239_v52 = vld [vmem:[%s1621_s1 + $0x120] sm:$0xff]   ;;  %v1242_v55 = vld [vmem:[%s1621_s1 + $0x128] sm:$0xff]   ;;  %v1244_v56 = vld [vmem:[%s1621_s1 + $0x170] sm:$0xff]  }
  0x12   :  { %1071 = vmatprep.subr.bf16.mxu1 %v1208_v18  ;;  %v1240_v54 = vld [vmem:[%s1621_s1 + $0x1a0] sm:$0xff]   ;;  %v1243_v57 = vld [vmem:[%s1621_s1 + $0x1a8] sm:$0xff]   ;;  %v1245_v58 = vld [vmem:[%s1621_s1 + $0x130] sm:$0xff]  }
  0x13   :  { %1050 = vmatpush3.bf16.msra.mxu0 %v1207_v17  ;;  %v36_v59 = vld [vmem:[%s1620_s0 + $0x10] sm:$0xff]  ;;  %v1247_v62 = vld [vmem:[%s1621_s1 + $0x178] sm:$0xff]  }
  0x14   :  { %1051 = vmatprep.subr.bf16.mxu0 %v1210_v20  ;;  %v1246_v60 = vld [vmem:[%s1621_s1 + $0x1b0] sm:$0xff]   ;;  %v965_v61 = vcombine.high %v36_v59, %v36_v59  ;;  %v1248_v63 = vld [vmem:[%s1621_s1 + $0x138] sm:$0xff]   ;;  %v964_v1 = vcombine.low %v36_v59, %v36_v59 }
  0x15   :  { %1072 = vmatpush3.bf16.msra.mxu1 %v1209_v19  ;;  %v1251_v0 = vld [vmem:[%s1621_s1 + $0x1b8] sm:$0xff]  }
  0x16   :  { %1073 = vmatprep.subr.bf16.mxu1 %v1212_v22  ;;  %v1252_v2 = vld [vmem:[%s1620_s0 + $0x18] ss:$0 sps:$4 sm:$0xff]  }
  0x17   :  { %1052 = vmatpush3.bf16.msra.mxu0 %v1211_v21 }
  0x18   :  { %1053 = vmatprep.subr.bf16.mxu0 %v1214_v24 }
  0x19   :  { %1074 = vmatpush3.bf16.msra.mxu1 %v1213_v23 }
  0x1a   :  { %1075 = vmatprep.subr.bf16.mxu1 %v1216_v26 }
  0x1b   :  { %1054 = vmatpush3.bf16.msra.mxu0 %v1215_v25 }
  0x1c   :  { %1055 = vmatprep.subr.bf16.mxu0 %v1218_v28 }
  0x1d   :  { %1076 = vmatpush3.bf16.msra.mxu1 %v1217_v27 }
  0x1e   :  { %1077 = vmatprep.subr.bf16.mxu1 %v1220_v30 }
  0x1f   :  { %1056 = vmatpush3.bf16.msra.mxu0 %v1219_v29 }
  0x20   :  { %1085 = vmatprep.subr.bf16.mxu0 %v1224_v35 }
  0x21   :  { %1078 = vmatpush3.bf16.msra.mxu1 %v1223_v34 }
  0x22   :  { %551 = vmatmul.mubr.bf16.vlgmr.msra.gmra.mrb[0].mxu0 %v960_v32  ;;  %1131 = vmatprep.subr.bf16.mxu1 %v1293_v42 }
  0x23   :  { %1086 = vmatpush3.bf16.msra.mxu0 %v1227_v39  ;;  %630 = vmatprep.mubr.bf16.mxu0 %v965_v61 }
  0x24   :  { %591 = vmatmul.mubr.bf16.vlgmr.msra.gmra.mrb[0].mxu1 %v962_v37  ;;  %1087 = vmatprep.subr.bf16.mxu0 %v1229_v41 }
  0x25   :  { %1132 = vmatpush3.bf16.msra.mxu1 %v1228_v40  ;;  %1147 = vmatprep.mubr.msk.bf16.mxu1 %vm1294_vm0, %v1293_v42 }
  0x26   :  { %1133 = vmatprep.subr.bf16.mxu1 %v1293_v42 }
  0x27   :  { %1088 = vmatpush3.bf16.msra.mxu0 %v1230_v43 }
  0x28   :  { %1089 = vmatprep.subr.bf16.mxu0 %v1232_v45 }
  0x29   :  { %1134 = vmatpush3.bf16.msra.mxu1 %v1231_v44 }
  0x2a   :  { %1135 = vmatprep.subr.bf16.mxu1 %v1293_v42 }
  0x2b   :  { %1090 = vmatpush3.bf16.msra.mxu0 %v1233_v46 }
  0x2c   :  { %1091 = vmatprep.subr.bf16.mxu0 %v1235_v48 }
  0x2d   :  { %1136 = vmatpush3.bf16.msra.mxu1 %v1234_v47 }
  0x2e   :  { %1137 = vmatprep.subr.bf16.mxu1 %v1293_v42 }
  0x2f   :  { %1092 = vmatpush3.bf16.msra.mxu0 %v1236_v49 }
  0x30   :  { %1093 = vmatprep.subr.bf16.mxu0 %v1238_v50 }
  0x31   :  { %1138 = vmatpush3.bf16.msra.mxu1 %v1237_v51 }
  0x32   :  { %1139 = vmatprep.subr.bf16.mxu1 %v1293_v42 }
  0x33   :  { %1094 = vmatpush3.bf16.msra.mxu0 %v1239_v52 }
  0x34   :  { %1095 = vmatprep.subr.bf16.mxu0 %v1241_v53 }
  0x35   :  { %1140 = vmatpush3.bf16.msra.mxu1 %v1240_v54 }
  0x36   :  { %1141 = vmatprep.subr.bf16.mxu1 %v1293_v42 }
  0x37   :  { %1096 = vmatpush3.bf16.msra.mxu0 %v1242_v55 }
  0x38   :  { %1097 = vmatprep.subr.bf16.mxu0 %v1244_v56 }
  0x39   :  { %1142 = vmatpush3.bf16.msra.mxu1 %v1243_v57 }
  0x3a   :  { %1143 = vmatprep.subr.bf16.mxu1 %v1293_v42 }
  0x3b   :  { %1098 = vmatpush3.bf16.msra.mxu0 %v1245_v58 }
  0x3c   :  { %1099 = vmatprep.subr.bf16.mxu0 %v1247_v62 }
  0x3d   :  { %1144 = vmatpush3.bf16.msra.mxu1 %v1246_v60 }
  0x3e   :  { %1145 = vmatprep.subr.bf16.mxu1 %v1293_v42 }
  0x3f   :  { %1100 = vmatpush3.bf16.msra.mxu0 %v1248_v63 }
  0x40   :  { %1151 = vmatprep.subr.bf16.mxu0 %v1293_v42 }
  0x41   :  { %14 = vsyncpa [#allocation3], 0  ;;  %1146 = vmatpush3.bf16.msra.mxu1 %v1251_v0  ;;  %v1253_v3 = vld [vmem:[%s1623_s3] sm:$0xff]   ;;  %v1254_v4 = vld [vmem:[%s1623_s3 + $0x8] sm:$0xff]   ;;  %vm719_vm1 = vcmask 523264   ;;  %vm931_vm2 = vcmask 80896  }
  0x42   :  { %631 = vmatmul.mubr.bf16.vlgmr.msra.gmra.mrb[4].mxu0 %v964_v1  ;;  %1163 = vmatprep.subr.bf16.mxu1 %v1293_v42  ;;  %v1255_v5 = vld [vmem:[%s1623_s3 + $0x10] sm:$0xff]   ;;  %v1256_v6 = vld [vmem:[%s1623_s3 + $0x18] sm:$0xff]   ;;  %v1257_v7 = vld [vmem:[%s1625_s5] sm:$0xff]  }
  0x43   :  { %1159 = vmatprep.mubr.msk.bf16.mxu0 %vm1294_vm0, %v1293_v42  ;;  %1152 = vmatpush3.bf16.msra.mxu0 %v1253_v3  ;;  %v1258_v8 = vld [vmem:[%s1625_s5 + $0x8] sm:$0xff]   ;;  %v959_v10 = vld [vmem:[%s1622_s2] ss:$0 sm:$0xff]  ;;  %v1259_v35 = vld [vmem:[%s1625_s5 + $0x10] sm:$0xff]  }
  0x44   :  { %1148 = vmatmul.mubr.bf16.vlgmr.msra.gmra.mrb[4].mxu1 %v1252_v2  ;;  %1153 = vmatprep.subr.bf16.mxu0 %v1293_v42  ;;  %v1260_v36 = vld [vmem:[%s1625_s5 + $0x18] sm:$0xff]   ;;  %v1261_v37 = vld [vmem:[%s1627_s7] sm:$0xff]   ;;  %v1262_v38 = vld [vmem:[%s1627_s7 + $0x8] sm:$0xff]  }
  0x45   :  { %1171 = vmatprep.mubr.msk.bf16.mxu1 %vm1294_vm0, %v1293_v42  ;;  %1164 = vmatpush3.bf16.msra.mxu1 %v1257_v7  ;;  %v1023_v39 = vld [vmem:[%s1624_s4] ss:$0 sm:$0xff]  ;;  %v1263_v48 = vld [vmem:[%s1627_s7 + $0x10] sm:$0xff]   ;;  %v1264_v49 = vld [vmem:[%s1627_s7 + $0x18] sm:$0xff]  }
  0x46   :  { %1165 = vmatprep.subr.bf16.mxu1 %v1293_v42  ;;  %v1029_v50 = vld [vmem:[%s1626_s6] ss:$0 sm:$0xff]  ;;  %s1295_s6 = smov [#allocation2]  }
  0x47   :  { %1154 = vmatpush3.bf16.msra.mxu0 %v1254_v4  ;;  %s951_s7 = sshll.u32 %s1295_s6, 4  ;;  %s952_s7 = int_to_ptr.vmem [resolvable:$true] %s951_s7 }
  0x48   :  { %1155 = vmatprep.subr.bf16.mxu0 %v1293_v42  ;;  %p1274_p1 = scmp.lt.s32.totalorder %s952_s7, %s952_s7 }
  0x49   :  { %1166 = vmatpush3.bf16.msra.mxu1 %v1258_v8 }
  0x4a   :  { %1167 = vmatprep.subr.bf16.mxu1 %v1293_v42 }
  0x4b   :  { %1156 = vmatpush3.bf16.msra.mxu0 %v1255_v5 }
  0x4c   :  { %1157 = vmatprep.subr.bf16.mxu0 %v1293_v42 }
  0x4d   :  { %1168 = vmatpush3.bf16.msra.mxu1 %v1259_v35 }
  0x4e   :  { %1169 = vmatprep.subr.bf16.mxu1 %v1293_v42 }
  0x4f   :  { %1158 = vmatpush3.bf16.msra.mxu0 %v1256_v6 }
  0x50   :  { %1175 = vmatprep.subr.bf16.mxu0 %v1293_v42 }
  0x51   :  { %1170 = vmatpush3.bf16.msra.mxu1 %v1260_v36 }
  0xf5   :  { %v1057_v9 = vpop.f32.mrb[0].mxu0 }
  0xf6   :  { %v1058_v11 = vpop.f32.mrb[1].mxu0 }
  0xf7   :  { %v1059_v12 = vadd.f32 %v1058_v11, %v1057_v9  ;;  %v1060_v13 = vpop.f32.mrb[2].mxu0  ;;  %v1079_v14 = vpop.f32.mrb[0].mxu1 }
  0xf8   :  { %v1061_v15 = vpop.f32.mrb[3].mxu0  ;;  %v1080_v16 = vpop.f32.mrb[1].mxu1 }
  0xf9   :  { %v553_v17 = vadd.f32 %v1059_v12, %v959_v10  ;;  %v1081_v18 = vadd.f32 %v1080_v16, %v1079_v14  ;;  %v1082_v19 = vpop.f32.mrb[2].mxu1 }
  0xfa   :  { %v1083_v20 = vpop.f32.mrb[3].mxu1 }
  0xfb   :  { %v593_v21 = vadd.f32 %v1081_v18, %v553_v17 }
 0x115   :  { %v1101_v22 = vpop.f32.mrb[4].mxu0 }
 0x116   :  { %v1102_v23 = vpop.f32.mrb[5].mxu0 }
 0x117   :  { %v1103_v24 = vadd.f32 %v1102_v23, %v1101_v22  ;;  %v1104_v25 = vpop.f32.mrb[6].mxu0  ;;  %v672_v26 = vpop.f32.mrb[4].mxu1 }
 0x118   :  { %v1105_v27 = vpop.f32.mrb[7].mxu0  ;;  %v1149_v28 = vpop.f32.mrb[5].mxu1 }
 0x119   :  { %v633_v29 = vadd.f32 %v1103_v24, %v593_v21  ;;  %v675_v30 = vpop.f32.mrb[6].mxu1 }
 0x11a   :  { %v1150_v31 = vpop.f32.mrb[7].mxu1 }
 0x11b   :  { %v673_v32 = vadd.f32 %v672_v26, %v633_v29 }
 0x11d   :  { %v678_v33 = vmax.f32 %v673_v32, 0.0 }
 0x11f   :  { %v679_v34 = vpack.c.bf16 %v678_v33, %v678_v33 }
 0x121   :  { %1160 = vmatmul.mubr.msk.bf16.vlgmr.msra.gmra.mrb[8].mxu0 %vm719_vm1, %v679_v34 }
 0x122   :  { %1183 = vmatprep.mubr.msk.bf16.mxu0 %vm1294_vm0, %v1293_v42  ;;  %1176 = vmatpush3.bf16.msra.mxu0 %v1261_v37 }
 0x123   :  { %1177 = vmatprep.subr.bf16.mxu0 %v1293_v42 }
 0x126   :  { %1178 = vmatpush3.bf16.msra.mxu0 %v1262_v38 }
 0x127   :  { %1179 = vmatprep.subr.bf16.mxu0 %v1293_v42 }
 0x12a   :  { %1180 = vmatpush3.bf16.msra.mxu0 %v1263_v48 }
 0x12b   :  { %1181 = vmatprep.subr.bf16.mxu0 %v1293_v42  ;;  %v1035_v42 = vld [vmem:[%s1628_s8] ss:$0 sm:$0xff]  ;;  %s1269_s8 = scalar_lea.vmem %s952_s7, 128 }
 0x12c   :  { %p1270_p0 = scmp.ne.s32.totalorder %s952_s7, %s1269_s8  ;;  %p1275_p2 = scmp.lt.s32.totalorder %s1269_s8, %s1269_s8 }
 0x12e   :  { %1182 = vmatpush3.bf16.msra.mxu0 %v1264_v49  ;;  %p1276_p3 = por %p1275_p2, %p1274_p1 }
 0x130   :  { %p1277_p4 = pnand %p1276_p3, %p1270_p0 }
 0x1f4   :  { %v757_v40 = vpop.f32.mrb[8].mxu0 }
 0x1f5   :  { %v758_v41 = vadd.f32 %v1023_v39, %v757_v40  ;;  %v1161_v43 = vpop.f32.mrb[9].mxu0 }
 0x1f6   :  { %v760_v44 = vpop.f32.mrb[10].mxu0 }
 0x1f7   :  { %v763_v45 = vmax.f32 %v758_v41, 0.0  ;;  %v1162_v46 = vpop.f32.mrb[11].mxu0 }
 0x1f9   :  { %v764_v47 = vpack.c.bf16 %v763_v45, %v763_v45 }
 0x1fb   :  { %1172 = vmatmul.mubr.msk.bf16.vlgmr.msra.gmra.mrb[8].mxu1 %vm719_vm1, %v764_v47 }
 0x2ce   :  { %v841_v51 = vpop.f32.mrb[8].mxu1 }
 0x2cf   :  { %v842_v52 = vadd.f32 %v1029_v50, %v841_v51  ;;  %v1173_v53 = vpop.f32.mrb[9].mxu1 }
 0x2d0   :  { %v844_v54 = vpop.f32.mrb[10].mxu1 }
 0x2d1   :  { %v847_v55 = vmax.f32 %v842_v52, 0.0  ;;  %v1174_v56 = vpop.f32.mrb[11].mxu1 }
 0x2d3   :  { %v848_v57 = vpack.c.bf16 %v847_v55, %v847_v55 }
 0x2d5   :  { %1184 = vmatmul.mubr.msk.bf16.vlgmr.msra.gmra.mrb[12].mxu0 %vm719_vm1, %v848_v57 }
 0x3a8   :  { %v925_v58 = vpop.f32.mrb[12].mxu0 }
 0x3a9   :  { %v926_v59 = vadd.f32 %v1035_v42, %v925_v58  ;;  %v1185_v60 = vpop.f32.mrb[13].mxu0 }
 0x3aa   :  { %v928_v61 = vpop.f32.mrb[14].mxu0 }
 0x3ab   :  { %v1186_v62 = vpop.f32.mrb[15].mxu0  ;;  %v932_v63 = vsel %vm931_vm2, %v926_v59, -inf }
 0x3ac   :  { %933 = vmax.xlane.f32.xlu0 %v932_v63 }
 0x439   :  { %v934_v0 = vpop.xlane.xlu0 %933 }
 0x43a   :  { %v935_v1 = vsub.f32 %v926_v59, %v934_v0 }
 0x43c   :  { %v936_v2 = vmul.f32 1.442695, %v935_v1 }
 0x43e   :  { %1265 = vpow2.f32 %v936_v2 }
 0x448   :  { %v1266_v3 = vpop.eup %1265 }
 0x449   :  { %v938_v4 = vsel %vm931_vm2, %v1266_v3, 0.0 }
 0x44a   :  { %939 = vadd.xlane.f32.xlu0 %v938_v4 }
 0x4d7   :  { %v940_v5 = vpop.xlane.xlu0 %939 }
 0x4d8   :  { %1267 = vlog2.f32 %v940_v5 }
 0x4e2   :  { %v1268_v6 = vpop.eup %1267 }
 0x4e3   :  { %v942_v7 = vmul.f32 0.6931472, %v1268_v6 }
 0x4e5   :  { %v943_v8 = vsub.f32 %v935_v1, %v942_v7 }
 0x4e7   :  { %944 = vst.msk [vmem:[#allocation2] sm:$0xff] %vm931_vm2, %v943_v8 }
 0x4e8   :  { %1280 = shalt.err (!%p1277_p4)
}
 0x4e9   :  { %s1281_s29 = scalar_lea.hbm %s1629_s9, 128 }
 0x4ea   :  { %p1282_p5 = scmp.ne.s32.totalorder %s1629_s9, %s1281_s29  ;;  %p1285_p6 = scmp.lt.u32.totalorder %s1281_s29, %s1629_s9 }
 0x4ec   :  { %p1287_p7 = pnand %p1285_p6, %p1282_p5 }
 0x4ee   :  { %1290 = shalt.err (!%p1287_p7)
}
 0x4ef   :  { %954 = dma.vmem_to_hbm [thread:$0]  %s952_s7, 128, %s1629_s9, [#allocation3]  }
 0x4f0   :  { %1291 = dma.done.wait [#allocation3], 128  }
 0x4f1   :  { %1292 = vsyncadd [#allocation3], 4294967168 }
 0x4f2   :  { %958 = vsyncpa [#allocation3], 1 }

</bundles_post_ra>
